<compile_context>
chip_gen: v7x
topology: tpu7x:2x2x1
jax: 0.10.0
libtpu: 0.0.40
codegen_flags: <defaults>
</compile_context>

<pallas_src>
import functools

import jax
import jax.numpy as jnp
from jax.experimental import pallas as pl
from jax.experimental.pallas import tpu as pltpu

N, H, W, C = 2, 16, 16, 8     # batch, height, width, channels (inplanes == planes)
WC = W * C                    # lane-dense row width (= 128 here)
EPS = 1e-5


def basic_block_kernel(x_ref, b1_ref, b2_ref,
                       g1_ref, be1_ref, g2_ref, be2_ref, o_ref, *, hh, cc):
    """Whole BasicBlock on one VMEM-resident, lane-dense tile.

    x_ref      : (N*H, W*C)      f32   input activations, lane-dense rows
    b1/b2_ref  : (3*W*C, W*C)    bf16  fused block-banded conv weights (3 kh taps along K)
    g*/be*_ref : (1, W*C)        f32   BN gamma / beta, tiled over W in lanes
    o_ref      : (N*H, W*C)            output (input dtype)
    """
    rows, wc = x_ref.shape
    inv_cnt = 1.0 / float(rows * (wc // cc))          # BN count per channel = N*H*W

    x2 = x_ref[...].astype(jnp.float32)               # residual kept in f32

    # Batch-safe H-direction padding masks (h == 0 / h == H-1 rows), built once.
    hpos = jax.lax.broadcasted_iota(jnp.int32, (rows, wc), 0) % hh
    top = hpos == 0
    bot = hpos == hh - 1

    # Channel sum/broadcast matrix S[i, j] = (i % C == j % C), built in-kernel
    # from iotas (exact 0/1) -> no HBM traffic for it.
    ci = jax.lax.broadcasted_iota(jnp.int32, (wc, wc), 0) % cc
    cj = jax.lax.broadcasted_iota(jnp.int32, (wc, wc), 1) % cc
    s_mat = (ci == cj).astype(jnp.float32)

    def conv3x3(v2, band_ref):
        # x at h-1 / h+1 via XLU sublane rolls, zeroing rows that cross an
        # image (batch) boundary; W-direction zero padding lives in the band.
        up = jnp.where(top, 0.0, pltpu.roll(v2, 1, 0))          # x[.., h-1, ..]
        dn = jnp.where(bot, 0.0, pltpu.roll(v2, rows - 1, 0))   # x[.., h+1, ..]
        # One bf16 cast per conv on the fused (rows, 3*WC) LHS, one MXU push.
        lhs = jnp.concatenate([up, v2, dn], axis=-1).astype(jnp.bfloat16)
        return jnp.dot(lhs, band_ref[...], preferred_element_type=jnp.float32)

    def batchnorm(v2, g_ref, be_ref):
        # Training-mode BN over (N, H, W); single-pass stats kept in f32.
        s1 = jnp.sum(v2, axis=0, keepdims=True)                  # (1, WC)
        s2 = jnp.sum(v2 * v2, axis=0, keepdims=True)             # (1, WC)
        red = jnp.dot(jnp.concatenate([s1, s2], axis=0), s_mat,
                      preferred_element_type=jnp.float32)        # per-channel, bcast over W
        mean = red[0:1, :] * inv_cnt
        var = red[1:2, :] * inv_cnt - mean * mean                # biased variance
        scale = g_ref[...] * jax.lax.rsqrt(var + EPS)            # rsqrt -> EUP slot
        shift = be_ref[...] - mean * scale
        return v2 * scale + shift                                # single fused scale/shift

    out = conv3x3(x2, b1_ref)
    out = jnp.maximum(batchnorm(out, g1_ref, be1_ref), 0.0)
    out = conv3x3(out, b2_ref)
    out = batchnorm(out, g2_ref, be2_ref)
    o_ref[...] = jnp.maximum(out + x2, 0.0).astype(o_ref.dtype)  # residual + ReLU, lane-dense store


def _band_weights(wt, w, c):
    """Fold a (3,3,Cin,Cout) HWIO kernel into ONE fused (3*W*C, W*C) band matrix.

    Rows [kh*W*C + w_in*C + ci], cols [w_out*C + co] hold wt[kh, kw, ci, co]
    with w_in = w_out + kw - 1; out-of-range w_in entries are dropped, which
    implements the conv's W-direction zero padding exactly.  The three kh taps
    are stacked along K so the whole conv is a single matmul.
    """
    taps = []
    for kh in range(3):
        b = jnp.zeros((w * c, w * c), jnp.float32)
        for kw in range(3):
            b = b + jnp.kron(jnp.eye(w, k=1 - kw, dtype=jnp.float32), wt[kh, kw])
        taps.append(b)
    return jnp.concatenate(taps, axis=0).astype(jnp.bfloat16)    # (3*W*C, W*C)


def basic_block(x, w1, w2, g1, b1, g2, b2):
    n, h, w, c = x.shape
    wc = w * c
    rows = n * h

    x_ld = x.reshape(rows, wc)                                   # lane-dense view (free)
    band1 = _band_weights(w1, w, c)
    band2 = _band_weights(w2, w, c)
    g1_ld = jnp.tile(g1.reshape(1, c), (1, w))
    b1_ld = jnp.tile(b1.reshape(1, c), (1, w))
    g2_ld = jnp.tile(g2.reshape(1, c), (1, w))
    b2_ld = jnp.tile(b2.reshape(1, c), (1, w))

    vmem = pl.BlockSpec(memory_space=pltpu.MemorySpace.VMEM)
    flops = 2 * (2 * rows * (3 * wc) * wc) + 2 * (2 * 2 * wc * wc) + 24 * rows * wc
    bytes_accessed = (2 * rows * wc) * 4 + (band1.size + band2.size) * 2 + 4 * wc * 4

    kernel = functools.partial(basic_block_kernel, hh=h, cc=c)

    out_ld = pl.pallas_call(
        kernel,
        out_shape=jax.ShapeDtypeStruct((rows, wc), x.dtype),
        in_specs=[vmem] * 7,
        out_specs=vmem,
        cost_estimate=pl.CostEstimate(
            flops=flops, transcendentals=2 * wc, bytes_accessed=bytes_accessed),
    )(x_ld, band1, band2, g1_ld, b1_ld, g2_ld, b2_ld)

    return out_ld.reshape(n, h, w, c)


# ---------------- pure-JAX reference (sanity check) ----------------
def reference(x, w1, w2, g1, b1, g2, b2):
    def conv(v, wt):
        return jax.lax.conv_general_dilated(
            v, wt, window_strides=(1, 1), padding=((1, 1), (1, 1)),
            dimension_numbers=("NHWC", "HWIO", "NHWC"))

    def bn(v, g, b):
        mean = jnp.mean(v, axis=(0, 1, 2), keepdims=True)
        var = jnp.mean((v - mean) ** 2, axis=(0, 1, 2), keepdims=True)
        return ((v - mean) / jnp.sqrt(var + EPS)) * g.reshape(1, 1, 1, -1) \
               + b.reshape(1, 1, 1, -1)

    out = jnp.maximum(bn(conv(x, w1), g1, b1), 0.0)
    out = bn(conv(out, w2), g2, b2)
    return jnp.maximum(out + x, 0.0)


if __name__ == "__main__":
    key = jax.random.PRNGKey(0)
    ks = jax.random.split(key, 7)

    # deterministic synthetic parameters (shapes from BasicBlock.__init__)
    x = jax.random.normal(ks[0], (N, H, W, C), jnp.float32)
    w1 = 0.1 * jax.random.normal(ks[1], (3, 3, C, C), jnp.float32)   # conv1 (HWIO)
    w2 = 0.1 * jax.random.normal(ks[2], (3, 3, C, C), jnp.float32)   # conv2 (HWIO)
    g1 = 1.0 + 0.1 * jax.random.normal(ks[3], (1, C), jnp.float32)   # bn1 gamma
    b1 = 0.1 * jax.random.normal(ks[4], (1, C), jnp.float32)         # bn1 beta
    g2 = 1.0 + 0.1 * jax.random.normal(ks[5], (1, C), jnp.float32)   # bn2 gamma
    b2 = 0.1 * jax.random.normal(ks[6], (1, C), jnp.float32)         # bn2 beta

    out = basic_block(x, w1, w2, g1, b1, g2, b2)
    out = jax.block_until_ready(out)

    ref = reference(x, w1, w2, g1, b1, g2, b2)
    assert out.shape == x.shape and out.dtype == x.dtype
    assert bool(jnp.all(jnp.isfinite(out)))
    # bf16 MXU operands -> ~1e-2 relative error is the intended precision tradeoff.
    assert bool(jnp.allclose(out, ref, atol=2e-2, rtol=2e-2)), \
        f"max abs err {float(jnp.max(jnp.abs(out - ref)))}"
    print("KERNEL_OK")
</pallas_src>

<mosaic_0001>
module attributes {stable_mosaic.version = 11 : i64} {
  func.func @basic_block_kernel(%arg0: memref<32x128xf32, #tpu.memory_space<vmem>>, %arg1: memref<384x128xbf16, #tpu.memory_space<vmem>>, %arg2: memref<384x128xbf16, #tpu.memory_space<vmem>>, %arg3: memref<1x128xf32, #tpu.memory_space<vmem>>, %arg4: memref<1x128xf32, #tpu.memory_space<vmem>>, %arg5: memref<1x128xf32, #tpu.memory_space<vmem>>, %arg6: memref<1x128xf32, #tpu.memory_space<vmem>>, %arg7: memref<32x128xf32, #tpu.memory_space<vmem>>) attributes {dimension_semantics = [], scalar_prefetch = 0 : i64, scratch_operands = 0 : i64, tpu.core_type = #tpu.core_type<tc>} {
    %c0 = arith.constant 0 : index
    %c0_0 = arith.constant 0 : index
    %0 = vector.load %arg0[%c0, %c0_0] : memref<32x128xf32, #tpu.memory_space<vmem>>, vector<32x128xf32>
    %1 = tpu.iota {dimensions = array<i32: 0>} : vector<32x128xi32>
    %c16_i32 = arith.constant 16 : i32
    %c0_i32 = arith.constant 0 : i32
    %2 = arith.cmpi eq, %c16_i32, %c0_i32 : i32
    %c1_i32 = arith.constant 1 : i32
    %3 = arith.select %2, %c1_i32, %c16_i32 : i32
    %4 = vector.broadcast %3 : i32 to vector<32x128xi32>
    %5 = arith.remsi %1, %4 : vector<32x128xi32>
    %c0_i32_1 = arith.constant 0 : i32
    %6 = vector.broadcast %c0_i32_1 : i32 to vector<32x128xi32>
    %7 = arith.cmpi ne, %5, %6 : vector<32x128xi32>
    %c0_i32_2 = arith.constant 0 : i32
    %8 = vector.broadcast %c0_i32_2 : i32 to vector<32x128xi32>
    %9 = arith.cmpi slt, %5, %8 : vector<32x128xi32>
    %c0_i32_3 = arith.constant 0 : i32
    %10 = arith.cmpi slt, %3, %c0_i32_3 : i32
    %11 = vector.broadcast %10 : i1 to vector<32x128xi1>
    %12 = vector.broadcast %11 : vector<32x128xi1> to vector<32x128xi1>
    %13 = arith.xori %9, %12 : vector<32x128xi1>
    %14 = arith.andi %13, %7 : vector<32x128xi1>
    %15 = vector.broadcast %3 : i32 to vector<32x128xi32>
    %16 = arith.addi %5, %15 : vector<32x128xi32>
    %17 = arith.select %14, %16, %5 : vector<32x128xi1>, vector<32x128xi32>
    %c0_i32_4 = arith.constant 0 : i32
    %18 = vector.broadcast %c0_i32_4 : i32 to vector<32x128xi32>
    %19 = arith.cmpi eq, %17, %18 : vector<32x128xi32>
    %c15_i32 = arith.constant 15 : i32
    %20 = vector.broadcast %c15_i32 : i32 to vector<32x128xi32>
    %21 = arith.cmpi eq, %17, %20 : vector<32x128xi32>
    %22 = tpu.iota {dimensions = array<i32: 0>} : vector<128x128xi32>
    %c8_i32 = arith.constant 8 : i32
    %c0_i32_5 = arith.constant 0 : i32
    %23 = arith.cmpi eq, %c8_i32, %c0_i32_5 : i32
    %c1_i32_6 = arith.constant 1 : i32
    %24 = arith.select %23, %c1_i32_6, %c8_i32 : i32
    %25 = vector.broadcast %24 : i32 to vector<128x128xi32>
    %26 = arith.remsi %22, %25 : vector<128x128xi32>
    %c0_i32_7 = arith.constant 0 : i32
    %27 = vector.broadcast %c0_i32_7 : i32 to vector<128x128xi32>
    %28 = arith.cmpi ne, %26, %27 : vector<128x128xi32>
    %c0_i32_8 = arith.constant 0 : i32
    %29 = vector.broadcast %c0_i32_8 : i32 to vector<128x128xi32>
    %30 = arith.cmpi slt, %26, %29 : vector<128x128xi32>
    %c0_i32_9 = arith.constant 0 : i32
    %31 = arith.cmpi slt, %24, %c0_i32_9 : i32
    %32 = vector.broadcast %31 : i1 to vector<128x128xi1>
    %33 = vector.broadcast %32 : vector<128x128xi1> to vector<128x128xi1>
    %34 = arith.xori %30, %33 : vector<128x128xi1>
    %35 = arith.andi %34, %28 : vector<128x128xi1>
    %36 = vector.broadcast %24 : i32 to vector<128x128xi32>
    %37 = arith.addi %26, %36 : vector<128x128xi32>
    %38 = arith.select %35, %37, %26 : vector<128x128xi1>, vector<128x128xi32>
    %39 = tpu.iota {dimensions = array<i32: 1>} : vector<128x128xi32>
    %c8_i32_10 = arith.constant 8 : i32
    %c0_i32_11 = arith.constant 0 : i32
    %40 = arith.cmpi eq, %c8_i32_10, %c0_i32_11 : i32
    %c1_i32_12 = arith.constant 1 : i32
    %41 = arith.select %40, %c1_i32_12, %c8_i32_10 : i32
    %42 = vector.broadcast %41 : i32 to vector<128x128xi32>
    %43 = arith.remsi %39, %42 : vector<128x128xi32>
    %c0_i32_13 = arith.constant 0 : i32
    %44 = vector.broadcast %c0_i32_13 : i32 to vector<128x128xi32>
    %45 = arith.cmpi ne, %43, %44 : vector<128x128xi32>
    %c0_i32_14 = arith.constant 0 : i32
    %46 = vector.broadcast %c0_i32_14 : i32 to vector<128x128xi32>
    %47 = arith.cmpi slt, %43, %46 : vector<128x128xi32>
    %c0_i32_15 = arith.constant 0 : i32
    %48 = arith.cmpi slt, %41, %c0_i32_15 : i32
    %49 = vector.broadcast %48 : i1 to vector<128x128xi1>
    %50 = vector.broadcast %49 : vector<128x128xi1> to vector<128x128xi1>
    %51 = arith.xori %47, %50 : vector<128x128xi1>
    %52 = arith.andi %51, %45 : vector<128x128xi1>
    %53 = vector.broadcast %41 : i32 to vector<128x128xi32>
    %54 = arith.addi %43, %53 : vector<128x128xi32>
    %55 = arith.select %52, %54, %43 : vector<128x128xi1>, vector<128x128xi32>
    %56 = arith.cmpi eq, %38, %55 : vector<128x128xi32>
    %57 = arith.extui %56 : vector<128x128xi1> to vector<128x128xi32>
    %58 = arith.sitofp %57 : vector<128x128xi32> to vector<128x128xf32>
    %c1_i32_16 = arith.constant 1 : i32
    %59 = tpu.dynamic_rotate %0 by %c1_i32_16 dim 0 : vector<32x128xf32>, i32 -> vector<32x128xf32>
    %cst = arith.constant 0.000000e+00 : f32
    %60 = vector.broadcast %cst : f32 to vector<32x128xf32>
    %61 = arith.select %19, %60, %59 : vector<32x128xi1>, vector<32x128xf32>
    %c31_i32 = arith.constant 31 : i32
    %62 = tpu.dynamic_rotate %0 by %c31_i32 dim 0 : vector<32x128xf32>, i32 -> vector<32x128xf32>
    %cst_17 = arith.constant 0.000000e+00 : f32
    %63 = vector.broadcast %cst_17 : f32 to vector<32x128xf32>
    %64 = arith.select %21, %63, %62 : vector<32x128xi1>, vector<32x128xf32>
    %65 = tpu.concatenate %61, %0, %64 in 1 : vector<32x128xf32>, vector<32x128xf32>, vector<32x128xf32> -> vector<32x384xf32>
    %66 = arith.truncf %65 : vector<32x384xf32> to vector<32x384xbf16>
    %c0_18 = arith.constant 0 : index
    %c0_19 = arith.constant 0 : index
    %67 = vector.load %arg1[%c0_18, %c0_19] : memref<384x128xbf16, #tpu.memory_space<vmem>>, vector<384x128xbf16>
    %cst_20 = arith.constant dense<0.000000e+00> : vector<32x128xf32>
    %68 = tpu.matmul %66, %67, %cst_20 {dimension_numbers = #tpu.dot_dimension_numbers<[1], [0], [0], [1], [0, 0, 1, 1], [], []>} : vector<32x384xbf16>, vector<384x128xbf16>, vector<32x128xf32> -> vector<32x128xf32>
    %cst_21 = arith.constant dense<0.000000e+00> : vector<128xf32>
    %69 = vector.multi_reduction <add>, %68, %cst_21 [0] : vector<32x128xf32> to vector<128xf32>
    %70 = vector.shape_cast %69 : vector<128xf32> to vector<1x128xf32>
    %71 = arith.mulf %68, %68 : vector<32x128xf32>
    %cst_22 = arith.constant dense<0.000000e+00> : vector<128xf32>
    %72 = vector.multi_reduction <add>, %71, %cst_22 [0] : vector<32x128xf32> to vector<128xf32>
    %73 = vector.shape_cast %72 : vector<128xf32> to vector<1x128xf32>
    %74 = tpu.concatenate %70, %73 in 0 : vector<1x128xf32>, vector<1x128xf32> -> vector<2x128xf32>
    %cst_23 = arith.constant dense<0.000000e+00> : vector<2x128xf32>
    %75 = tpu.matmul %74, %58, %cst_23 {dimension_numbers = #tpu.dot_dimension_numbers<[1], [0], [0], [1], [0, 0, 1, 1], [], []>} : vector<2x128xf32>, vector<128x128xf32>, vector<2x128xf32> -> vector<2x128xf32>
    %76 = vector.extract_strided_slice %75 {offsets = [0, 0], sizes = [1, 128], strides = [1, 1]} : vector<2x128xf32> to vector<1x128xf32>
    %cst_24 = arith.constant 0.001953125 : f32
    %77 = vector.broadcast %cst_24 : f32 to vector<1x128xf32>
    %78 = arith.mulf %76, %77 : vector<1x128xf32>
    %79 = vector.extract_strided_slice %75 {offsets = [1, 0], sizes = [1, 128], strides = [1, 1]} : vector<2x128xf32> to vector<1x128xf32>
    %cst_25 = arith.constant 0.001953125 : f32
    %80 = vector.broadcast %cst_25 : f32 to vector<1x128xf32>
    %81 = arith.mulf %79, %80 : vector<1x128xf32>
    %82 = arith.mulf %78, %78 : vector<1x128xf32>
    %83 = arith.subf %81, %82 : vector<1x128xf32>
    %c0_26 = arith.constant 0 : index
    %c0_27 = arith.constant 0 : index
    %84 = vector.load %arg3[%c0_26, %c0_27] : memref<1x128xf32, #tpu.memory_space<vmem>>, vector<1x128xf32>
    %cst_28 = arith.constant 9.99999974E-6 : f32
    %85 = vector.broadcast %cst_28 : f32 to vector<1x128xf32>
    %86 = arith.addf %83, %85 : vector<1x128xf32>
    %87 = math.rsqrt %86 : vector<1x128xf32>
    %88 = arith.mulf %84, %87 : vector<1x128xf32>
    %c0_29 = arith.constant 0 : index
    %c0_30 = arith.constant 0 : index
    %89 = vector.load %arg4[%c0_29, %c0_30] : memref<1x128xf32, #tpu.memory_space<vmem>>, vector<1x128xf32>
    %90 = arith.mulf %78, %88 : vector<1x128xf32>
    %91 = arith.subf %89, %90 : vector<1x128xf32>
    %92 = vector.broadcast %88 : vector<1x128xf32> to vector<32x128xf32>
    %93 = arith.mulf %68, %92 : vector<32x128xf32>
    %94 = vector.broadcast %91 : vector<1x128xf32> to vector<32x128xf32>
    %95 = arith.addf %93, %94 : vector<32x128xf32>
    %cst_31 = arith.constant 0.000000e+00 : f32
    %96 = vector.broadcast %cst_31 : f32 to vector<32x128xf32>
    %97 = arith.maximumf %95, %96 : vector<32x128xf32>
    %c1_i32_32 = arith.constant 1 : i32
    %98 = tpu.dynamic_rotate %97 by %c1_i32_32 dim 0 : vector<32x128xf32>, i32 -> vector<32x128xf32>
    %cst_33 = arith.constant 0.000000e+00 : f32
    %99 = vector.broadcast %cst_33 : f32 to vector<32x128xf32>
    %100 = arith.select %19, %99, %98 : vector<32x128xi1>, vector<32x128xf32>
    %c31_i32_34 = arith.constant 31 : i32
    %101 = tpu.dynamic_rotate %97 by %c31_i32_34 dim 0 : vector<32x128xf32>, i32 -> vector<32x128xf32>
    %cst_35 = arith.constant 0.000000e+00 : f32
    %102 = vector.broadcast %cst_35 : f32 to vector<32x128xf32>
    %103 = arith.select %21, %102, %101 : vector<32x128xi1>, vector<32x128xf32>
    %104 = tpu.concatenate %100, %97, %103 in 1 : vector<32x128xf32>, vector<32x128xf32>, vector<32x128xf32> -> vector<32x384xf32>
    %105 = arith.truncf %104 : vector<32x384xf32> to vector<32x384xbf16>
    %c0_36 = arith.constant 0 : index
    %c0_37 = arith.constant 0 : index
    %106 = vector.load %arg2[%c0_36, %c0_37] : memref<384x128xbf16, #tpu.memory_space<vmem>>, vector<384x128xbf16>
    %cst_38 = arith.constant dense<0.000000e+00> : vector<32x128xf32>
    %107 = tpu.matmul %105, %106, %cst_38 {dimension_numbers = #tpu.dot_dimension_numbers<[1], [0], [0], [1], [0, 0, 1, 1], [], []>} : vector<32x384xbf16>, vector<384x128xbf16>, vector<32x128xf32> -> vector<32x128xf32>
    %cst_39 = arith.constant dense<0.000000e+00> : vector<128xf32>
    %108 = vector.multi_reduction <add>, %107, %cst_39 [0] : vector<32x128xf32> to vector<128xf32>
    %109 = vector.shape_cast %108 : vector<128xf32> to vector<1x128xf32>
    %110 = arith.mulf %107, %107 : vector<32x128xf32>
    %cst_40 = arith.constant dense<0.000000e+00> : vector<128xf32>
    %111 = vector.multi_reduction <add>, %110, %cst_40 [0] : vector<32x128xf32> to vector<128xf32>
    %112 = vector.shape_cast %111 : vector<128xf32> to vector<1x128xf32>
    %113 = tpu.concatenate %109, %112 in 0 : vector<1x128xf32>, vector<1x128xf32> -> vector<2x128xf32>
    %cst_41 = arith.constant dense<0.000000e+00> : vector<2x128xf32>
    %114 = tpu.matmul %113, %58, %cst_41 {dimension_numbers = #tpu.dot_dimension_numbers<[1], [0], [0], [1], [0, 0, 1, 1], [], []>} : vector<2x128xf32>, vector<128x128xf32>, vector<2x128xf32> -> vector<2x128xf32>
    %115 = vector.extract_strided_slice %114 {offsets = [0, 0], sizes = [1, 128], strides = [1, 1]} : vector<2x128xf32> to vector<1x128xf32>
    %cst_42 = arith.constant 0.001953125 : f32
    %116 = vector.broadcast %cst_42 : f32 to vector<1x128xf32>
    %117 = arith.mulf %115, %116 : vector<1x128xf32>
    %118 = vector.extract_strided_slice %114 {offsets = [1, 0], sizes = [1, 128], strides = [1, 1]} : vector<2x128xf32> to vector<1x128xf32>
    %cst_43 = arith.constant 0.001953125 : f32
    %119 = vector.broadcast %cst_43 : f32 to vector<1x128xf32>
    %120 = arith.mulf %118, %119 : vector<1x128xf32>
    %121 = arith.mulf %117, %117 : vector<1x128xf32>
    %122 = arith.subf %120, %121 : vector<1x128xf32>
    %c0_44 = arith.constant 0 : index
    %c0_45 = arith.constant 0 : index
    %123 = vector.load %arg5[%c0_44, %c0_45] : memref<1x128xf32, #tpu.memory_space<vmem>>, vector<1x128xf32>
    %cst_46 = arith.constant 9.99999974E-6 : f32
    %124 = vector.broadcast %cst_46 : f32 to vector<1x128xf32>
    %125 = arith.addf %122, %124 : vector<1x128xf32>
    %126 = math.rsqrt %125 : vector<1x128xf32>
    %127 = arith.mulf %123, %126 : vector<1x128xf32>
    %c0_47 = arith.constant 0 : index
    %c0_48 = arith.constant 0 : index
    %128 = vector.load %arg6[%c0_47, %c0_48] : memref<1x128xf32, #tpu.memory_space<vmem>>, vector<1x128xf32>
    %129 = arith.mulf %117, %127 : vector<1x128xf32>
    %130 = arith.subf %128, %129 : vector<1x128xf32>
    %131 = vector.broadcast %127 : vector<1x128xf32> to vector<32x128xf32>
    %132 = arith.mulf %107, %131 : vector<32x128xf32>
    %133 = vector.broadcast %130 : vector<1x128xf32> to vector<32x128xf32>
    %134 = arith.addf %132, %133 : vector<32x128xf32>
    %135 = arith.addf %134, %0 : vector<32x128xf32>
    %cst_49 = arith.constant 0.000000e+00 : f32
    %136 = vector.broadcast %cst_49 : f32 to vector<32x128xf32>
    %137 = arith.maximumf %135, %136 : vector<32x128xf32>
    %c0_50 = arith.constant 0 : index
    %c0_51 = arith.constant 0 : index
    %138 = vector.load %arg7[%c0_50, %c0_51] : memref<32x128xf32, #tpu.memory_space<vmem>>, vector<32x128xf32>
    tpu.vector_store %arg7[%c0_50, %c0_51], %137 {strides = array<i32>} : memref<32x128xf32, #tpu.memory_space<vmem>>, vector<32x128xf32>,
    return
  }
}

</mosaic_0001>

<bundles_post_ra>
// kernel: tpu_custom_call.1
= control target key start
LH: loop header
LB: loop body
LE: loop exit
PB: predicated region body
PF: predicated region fallthrough
CT: control target
= control target key end

     0   :  { %12 = vsyncpa [#allocation3], 0  ;;  %s2464_s0 = inlined_call_operand.hbm [shape: f32[32,128], index: 0, kind: input, shape index: {}]   ;;  %s2465_s1 = inlined_call_operand.hbm [shape: bf16[384,128], index: 1, kind: input, shape index: {}]   ;;  %s2466_s2 = inlined_call_operand.hbm [shape: bf16[384,128], index: 2, kind: input, shape index: {}]   ;;  %s2467_s3 = inlined_call_operand.vmem [shape: f32[1,128], index: 3, kind: input, shape index: {}]   ;;  %s2468_s4 = inlined_call_operand.vmem [shape: f32[1,128], index: 4, kind: input, shape index: {}]   ;;  %s2469_s5 = inlined_call_operand.vmem [shape: f32[1,128], index: 5, kind: input, shape index: {}]   ;;  %s2470_s6 = inlined_call_operand.vmem [shape: f32[1,128], index: 6, kind: input, shape index: {}]   ;;  %s2471_s7 = inlined_call_operand.hbm [shape: f32[32,128], index: 7, kind: output, shape index: {}]  }
   0x1   :  { %13 = vsyncpa [#allocation6], 0 }
   0x2   :  { %14 = vsyncpa [#allocation4], 0  ;;  %s1923_s24 = smov [#allocation5]   ;;  %s1829_s28 = scalar_lea.hbm %s2465_s1, 3072 }
   0x3   :  { %s32_s25 = sshll.u32 %s1923_s24, 4  ;;  %p1830_p0 = scmp.ne.s32.totalorder %s2465_s1, %s1829_s28  ;;  %s33_s25 = int_to_ptr.vmem [resolvable:$true] %s32_s25 }
   0x4   :  { %p1833_p1 = scmp.lt.u32.totalorder %s1829_s28, %s2465_s1 }
   0x6   :  { %p1835_p2 = pnand %p1833_p1, %p1830_p0 }
   0x8   :  { %1838 = shalt.err (!%p1835_p2)
}
   0x9   :  { %s1839_s10 = scalar_lea.vmem %s33_s25, 3072  ;;  %p1844_p4 = scmp.lt.s32.totalorder %s33_s25, %s33_s25 }
   0xa   :  { %p1840_p3 = scmp.ne.s32.totalorder %s33_s25, %s1839_s10  ;;  %p1845_p5 = scmp.lt.s32.totalorder %s1839_s10, %s1839_s10 }
   0xc   :  { %p1846_p6 = por %p1845_p5, %p1844_p4 }
   0xe   :  { %p1847_p7 = pnand %p1846_p6, %p1840_p3 }
  0x10   :  { %1850 = shalt.err (!%p1847_p7)
}
  0x11   :  { %s1924_s11 = smov 64   ;;  %s1925_s12 = smov 4  }
  0x12   :  { %38 = dma.hbm_to_vmem [thread:$0]  %s2465_s1, 3072, %s33_s25, [#allocation6], %s1924_s11, %s1924_s11, %s1925_s12  }
  0x13   :  { %s1926_s15 = smov [#allocation2]   ;;  %s1851_s19 = scalar_lea.hbm %s2464_s0, 512 }
  0x14   :  { %s20_s16 = sshll.u32 %s1926_s15, 4  ;;  %p1852_p8 = scmp.ne.s32.totalorder %s2464_s0, %s1851_s19  ;;  %s21_s16 = int_to_ptr.vmem [resolvable:$true] %s20_s16 }
  0x15   :  { %p1855_p9 = scmp.lt.u32.totalorder %s1851_s19, %s2464_s0 }
  0x17   :  { %p1857_p10 = pnand %p1855_p9, %p1852_p8 }
  0x19   :  { %1860 = shalt.err (!%p1857_p10)
}
  0x1a   :  { %s1861_s24 = scalar_lea.vmem %s21_s16, 512  ;;  %p1866_p12 = scmp.lt.s32.totalorder %s21_s16, %s21_s16 }
  0x1b   :  { %p1862_p11 = scmp.ne.s32.totalorder %s21_s16, %s1861_s24  ;;  %p1867_p13 = scmp.lt.s32.totalorder %s1861_s24, %s1861_s24 }
  0x1d   :  { %p1868_p0 = por %p1867_p13, %p1866_p12 }
  0x1f   :  { %p1869_p1 = pnand %p1868_p0, %p1862_p11 }
  0x21   :  { %1872 = shalt.err (!%p1869_p1)
}
  0x22   :  { %s1927_s1 = smov 128   ;;  %s1928_s25 = smov 8  }
  0x23   :  { %26 = dma.hbm_to_vmem [thread:$0]  %s2464_s0, 512, %s21_s16, [#allocation3], %s1927_s1, %s1927_s1, %s1928_s25  }
  0x24   :  { %s1929_s28 = smov [#allocation7]   ;;  %s1873_s9 = scalar_lea.hbm %s2466_s2, 3072 }
  0x25   :  { %s44_s29 = sshll.u32 %s1929_s28, 4  ;;  %p1874_p2 = scmp.ne.s32.totalorder %s2466_s2, %s1873_s9  ;;  %s45_s29 = int_to_ptr.vmem [resolvable:$true] %s44_s29 }
  0x26   :  { %p1877_p3 = scmp.lt.u32.totalorder %s1873_s9, %s2466_s2 }
  0x28   :  { %p1879_p4 = pnand %p1877_p3, %p1874_p2 }
  0x2a   :  { %1882 = shalt.err (!%p1879_p4)
}
  0x2b   :  { %s1883_s17 = scalar_lea.vmem %s45_s29, 3072  ;;  %p1888_p6 = scmp.lt.s32.totalorder %s45_s29, %s45_s29 }
  0x2c   :  { %p1884_p5 = scmp.ne.s32.totalorder %s45_s29, %s1883_s17  ;;  %p1889_p7 = scmp.lt.s32.totalorder %s1883_s17, %s1883_s17 }
  0x2e   :  { %p1890_p8 = por %p1889_p7, %p1888_p6 }
  0x30   :  { %p1891_p9 = pnand %p1890_p8, %p1884_p5 }
  0x32   :  { %1894 = shalt.err (!%p1891_p9)
}
  0x33   :  { %50 = dma.hbm_to_vmem [thread:$0]  %s2466_s2, 3072, %s45_s29, [#allocation6], %s1924_s11, %s1924_s11, %s1925_s12  }
  0x34   :  { %1917 = dma.done.wait [#allocation3], 512  }
  0x35   :  { %1918 = vsyncadd [#allocation3], 4294966784 }
  0x36   :  { %1919 = dma.done.wait [#allocation6], 6144  }
  0x37   :  { %1920 = vsyncadd [#allocation6], 4294961152  ;;  %v1777_v0 = vld [vmem:[#allocation5 + $0x40] sm:$0xff]   ;;  %v1780_v3 = vld [vmem:[#allocation5 + $0x48] sm:$0xff]   ;;  %v73_v8 = vlaneseq  ;;  %vm1930_vm5 = vmmov 1   ;;  %v2526_v35 = vmov 0 }
  0x38   :  { %v1778_v1 = vld [vmem:[#allocation5] sm:$0xff]   ;;  %1495 = vmatprep.subr.bf16.mxu0 %v1777_v0  ;;  %v1781_v4 = vld [vmem:[#allocation5 + $0x8] sm:$0xff]   ;;  %v1783_v6 = vld [vmem:[#allocation5 + $0x50] sm:$0xff]  }
  0x39   :  { %v1779_v2 = vld [vmem:[#allocation5 + $0x80] sm:$0xff]   ;;  %1496 = vmatpush3.bf16.msra.mxu0 %v1778_v1  ;;  %v1782_v5 = vld [vmem:[#allocation5 + $0x88] sm:$0xff]   ;;  %v1784_v7 = vld [vmem:[#allocation5 + $0x10] sm:$0xff]   ;;  %v2023_v13 = vshrl.u32 %v73_v8, 7 }
  0x3a   :  { %1605 = vmatprep.subr.bf16.mxu1 %v1779_v2  ;;  %1497 = vmatprep.subr.bf16.mxu0 %v1780_v3  ;;  %v1785_v9 = vld [vmem:[#allocation5 + $0x90] sm:$0xff]   ;;  %v1786_v10 = vld [vmem:[#allocation5 + $0x58] sm:$0xff]   ;;  %v1789_v14 = vld [vmem:[#allocation5 + $0x60] sm:$0xff]   ;;  %v339_v3 = vand.u32 127, %v73_v8  ;;  %v1932_v8 = vmov 1.0|1.0  }
  0x3b   :  { %1606 = vmatpush3.bf16.msra.mxu1 %v1779_v2  ;;  %v1787_v11 = vld [vmem:[#allocation5 + $0x18] sm:$0xff]   ;;  %v1791_v15 = vld [vmem:[#allocation5 + $0xa0] sm:$0xff]   ;;  %v2026_v17 = vadd.s32 8, %v2023_v13  ;;  %v1792_v18 = vld [vmem:[#allocation5 + $0x68] sm:$0xff]   ;;  %v2029_v19 = vadd.s32 24, %v2023_v13  ;;  %v82_v20 = vand.u32 15, %v2023_v13 }
  0x3c   :  { %1607 = vmatprep.subr.bf16.mxu1 %v1782_v5  ;;  %v1788_v12 = vld [vmem:[#allocation5 + $0x98] sm:$0xff]   ;;  %v1790_v16 = vld [vmem:[#allocation5 + $0x20] sm:$0xff]   ;;  %v1794_v21 = vld [vmem:[#allocation5 + $0xa8] sm:$0xff]   ;;  %v2033_v22 = vadd.s32 16, %v2023_v13  ;;  %vm2477_vm0 = vcmp.lt.s32.totalorder %v2023_v13, 1  ;;  %vm2475_vm1 = vcmp.lt.s32.totalorder %v2023_v13, 7 }
  0x3d   :  { %1498 = vmatpush3.bf16.msra.mxu0 %v1781_v4  ;;  %v1793_v23 = vld [vmem:[#allocation5 + $0x28] sm:$0xff]   ;;  %v89_v24 = vand.u32 15, %v2026_v17  ;;  %v1795_v25 = vld [vmem:[#allocation5 + $0x70] sm:$0xff]   ;;  %v103_v26 = vand.u32 15, %v2029_v19  ;;  %v1798_v29 = vld [vmem:[#allocation5 + $0x78] sm:$0xff]   ;;  %vm2039_vm2 = vcmp.ne.s32.totalorder %v82_v20, 0 }
  0x3e   :  { %1499 = vmatprep.subr.bf16.mxu0 %v1783_v6  ;;  %v1796_v27 = vld [vmem:[#allocation5 + $0x30] sm:$0xff]   ;;  %v1800_v31 = vld [vmem:[#allocation5 + $0xb8] sm:$0xff]   ;;  %v2043_v32 = vld [vmem:[#allocation2] sm:$0xff]  ;;  %v96_v37 = vand.u32 15, %v2033_v22  ;;  %v157_v2 = vand.u32 7, %v2026_v17  ;;  %v150_v4 = vand.u32 7, %v2023_v13 }
  0x3f   :  { %1608 = vmatpush3.bf16.msra.mxu1 %v1782_v5  ;;  %v1797_v28 = vld [vmem:[#allocation5 + $0xb0] sm:$0xff]   ;;  %v2045_v33 = vld [vmem:[#allocation2 + $0x8] sm:$0xff]  ;;  %v2047_v34 = vld [vmem:[#allocation2 + $0x18] sm:$0xff]  ;;  %vm2049_vm3 = vcmp.ne.s32.totalorder %v89_v24, 15  ;;  %vm2053_vm4 = vcmp.ne.s32.totalorder %v103_v26, 15  ;;  %v400_v39 = vrot.slane %v2043_v32, 7 }
  0x40   :  { %1609 = vmatprep.subr.bf16.mxu1 %v1785_v9  ;;  %v1799_v38 = vld [vmem:[#allocation5 + $0x38] sm:$0xff]   ;;  %v401_v40 = vrot.slane %v2045_v33, 7  ;;  %v427_v41 = vpack.c.bf16 %v2045_v33, %v2043_v32  ;;  %v403_v42 = vrot.slane %v2047_v34, 7  ;;  %v2063_v43 = vld [vmem:[#allocation2 + $0x10] sm:$0xff]  ;;  %vm2068_vm6 = vmpackc.low %vm1930_vm5, %vm2039_vm2  ;;  %v413_v45 = vrot.slane %v2043_v32, 1 }
  0x41   :  { %1500 = vmatpush3.bf16.msra.mxu0 %v1784_v7  ;;  %v414_v46 = vrot.slane %v2045_v33, 1  ;;  %v415_v47 = vrot.slane %v2063_v43, 1  ;;  %v416_v48 = vrot.slane %v2047_v34, 1  ;;  %vm2083_vm7 = vmpackc.low %vm2049_vm3, %vm1930_vm5  ;;  %v402_v55 = vrot.slane %v2063_v43, 7 }
  0x42   :  { %1501 = vmatprep.subr.bf16.mxu0 %v1786_v10  ;;  %656 = vmatprep.mubr.bf16.mxu0 %v427_v41  ;;  %v407_v49 = vsel %vm2477_vm0, %v400_v39, %v401_v40  ;;  %v408_v50 = vsel %vm2477_vm0, %v403_v42, %v400_v39  ;;  %vm2094_vm8 = vmpackc.low %vm2053_vm4, %vm1930_vm5  ;;  %vm1492_vm9 = vcmp.ne.s32.totalorder %v96_v37, 0  ;;  %v430_v60 = vpack.c.bf16 %v2047_v34, %v2063_v43 }
  0x43   :  { %1610 = vmatpush3.bf16.msra.mxu1 %v1785_v9  ;;  %v419_v52 = vsel %vm2475_vm1, %v414_v46, %v415_v47  ;;  %v420_v53 = vsel %vm2475_vm1, %v413_v45, %v414_v46  ;;  %v418_v57 = vsel %vm2475_vm1, %v415_v47, %v416_v48  ;;  %v421_v58 = vsel %vm2475_vm1, %v416_v48, %v413_v45  ;;  %vm2108_vm10 = vmpackc.low %vm1930_vm5, %vm1492_vm9 }
  0x44   :  { %1611 = vmatprep.subr.bf16.mxu1 %v1788_v12  ;;  %v1413_v56 = vpack.c.bf16 %v419_v52, %v420_v53  ;;  %v1405_v59 = vpack.c.bf16 %v407_v49, %v408_v50  ;;  %v1417_v62 = vpack.c.bf16 %v421_v58, %v418_v57  ;;  %v405_v63 = vsel %vm2477_vm0, %v402_v55, %v403_v42 }
  0x45   :  { %1502 = vmatpush3.bf16.msra.mxu0 %v1787_v11  ;;  %v406_v0 = vsel %vm2477_vm0, %v401_v40, %v402_v55  ;;  %v2125_v5 = vand.u32 7, %v339_v3  ;;  %v1931_v9 = vmov 0.0|0.0   ;;  %v164_v10 = vand.u32 7, %v2033_v22 }
  0x46   :  { %1503 = vmatprep.subr.bf16.mxu0 %v1789_v14  ;;  %1621 = vmatprep.mubr.msk.bf16.mxu1 %vm2083_vm7, %v1413_v56  ;;  %v1409_v1 = vpack.c.bf16 %v405_v63, %v406_v0  ;;  %v171_v11 = vand.u32 7, %v2029_v19  ;;  %v137_v22 = vadd.s32 56, %v2023_v13  ;;  %v2522_v26 = vmov 0 }
  0x47   :  { %1612 = vmatpush3.bf16.msra.mxu1 %v1788_v12  ;;  %vm2128_vm11 = vcmp.eq.s32.totalorder %v150_v4, %v2125_v5  ;;  %vm2133_vm12 = vcmp.eq.s32.totalorder %v157_v2, %v2125_v5  ;;  %vm2152_vm14 = vcmp.eq.s32.totalorder %v164_v10, %v2125_v5  ;;  %v140_v36 = vadd.s32 80, %v2023_v13 }
  0x48   :  { %1613 = vmatprep.subr.bf16.mxu1 %v1791_v15  ;;  %vm2474_vm13 = vmpackc.low %vm2133_vm12, %vm2128_vm11  ;;  %vm2157_vm15 = vcmp.eq.s32.totalorder %v171_v11, %v2125_v5  ;;  %v199_v24 = vand.u32 7, %v137_v22  ;;  %v141_v37 = vadd.s32 88, %v2023_v13  ;;  %v2528_v40 = vmov 0 }
  0x49   :  { %1504 = vmatpush3.bf16.msra.mxu0 %v1790_v16  ;;  %v135_v16 = vadd.s32 40, %v2023_v13  ;;  %vm2472_vm2 = vmpackc.low %vm2157_vm15, %vm2152_vm14  ;;  %v2530_v41 = vmov 0  ;;  %v142_v42 = vadd.s32 96, %v2023_v13  ;;  %v143_v45 = vadd.s32 104, %v2023_v13 }
  0x4a   :  { %1505 = vmatprep.subr.bf16.mxu0 %v1792_v18  ;;  %v227_v39 = vand.u32 7, %v141_v37  ;;  %v2532_v48 = vmov 0  ;;  %v2534_v49 = vmov 0  ;;  %v144_v50 = vadd.s32 112, %v2023_v13 }
  0x4b   :  { %1614 = vmatpush3.bf16.msra.mxu1 %v1791_v15  ;;  %v134_v15 = vadd.s32 32, %v2023_v13  ;;  %v185_v18 = vand.u32 7, %v135_v16  ;;  %v234_v46 = vand.u32 7, %v142_v42  ;;  %v241_v47 = vand.u32 7, %v143_v45 }
  0x4c   :  { %1615 = vmatprep.subr.bf16.mxu1 %v1794_v21  ;;  %v145_v52 = vadd.s32 120, %v2023_v13  ;;  %v248_v53 = vand.u32 7, %v144_v50  ;;  %v1934_v56 = vmov 0.0   ;;  %v2536_v57 = vmov 0 }
  0x4d   :  { %1506 = vmatpush3.bf16.msra.mxu0 %v1793_v23  ;;  %v178_v17 = vand.u32 7, %v134_v15  ;;  %vm2180_vm4 = vcmp.eq.s32.totalorder %v185_v18, %v2125_v5  ;;  %v2538_v58 = vmov 0 }
  0x4e   :  { %1507 = vmatprep.subr.bf16.mxu0 %v1795_v25  ;;  %v2520_v25 = vmov 0  ;;  %v255_v55 = vand.u32 7, %v145_v52 }
  0x4f   :  { %1616 = vmatpush3.bf16.msra.mxu1 %v1794_v21  ;;  %vm2175_vm3 = vcmp.eq.s32.totalorder %v178_v17, %v2125_v5  ;;  %v136_v21 = vadd.s32 48, %v2023_v13 }
  0x50   :  { %1617 = vmatprep.subr.bf16.mxu1 %v1797_v28  ;;  %vm2473_vm5 = vmpackc.low %vm2180_vm4, %vm2175_vm3 }
  0x51   :  { %1508 = vmatpush3.bf16.msra.mxu0 %v1796_v27  ;;  %v192_v23 = vand.u32 7, %v136_v21  ;;  %v138_v27 = vadd.s32 64, %v2023_v13 }
  0x52   :  { %1509 = vmatprep.subr.bf16.mxu0 %v1798_v29 }
  0x53   :  { %1618 = vmatpush3.bf16.msra.mxu1 %v1797_v28  ;;  %vm2198_vm9 = vcmp.eq.s32.totalorder %v192_v23, %v2125_v5  ;;  %v139_v28 = vadd.s32 72, %v2023_v13  ;;  %v206_v29 = vand.u32 7, %v138_v27 }
  0x54   :  { %1619 = vmatprep.subr.bf16.mxu1 %v1800_v31  ;;  %v2521_v25 = vsel %vm2198_vm9, 4294967295, %v2520_v25 }
  0x55   :  { %1510 = vmatpush3.bf16.msra.mxu0 %v1799_v38  ;;  %v213_v30 = vand.u32 7, %v139_v28  ;;  %v220_v38 = vand.u32 7, %v140_v36 }
  0x56   :  { %1715 = vmatprep.subr.bf16.mxu0 %v1931_v9 }
  0x57   :  { %1620 = vmatpush3.bf16.msra.mxu1 %v1800_v31  ;;  %v2524_v31 = vmov 0  ;;  %vm2226_vm1 = vcmp.eq.s32.totalorder %v213_v30, %v2125_v5  ;;  %vm2244_vm0 = vcmp.eq.s32.totalorder %v220_v38, %v2125_v5 }
  0x58   :  { %1406 = vmatmul.mubr.msk.bf16.vlgmr.msra.gmra.mrb[0].mxu0 %vm2068_vm6, %v1405_v59  ;;  %v2527_v35 = vsel %vm2226_vm1, 4294967295, %v2526_v35  ;;  %v2529_v40 = vsel %vm2244_vm0, 4294967295, %v2528_v40 }
  0x59   :  { %664 = vmatprep.mubr.bf16.mxu0 %v430_v60  ;;  %1717 = vmatpush3.bf16.msk.msra.mxu0 %vm2474_vm13, %v1932_v8  ;;  %vm2221_vm13 = vcmp.eq.s32.totalorder %v206_v29, %v2125_v5 }
  0x5a   :  { %1622 = vmatmul.mubr.msk.bf16.vlgmr.msra.gmra.mrb[0].mxu1 %vm2094_vm8, %v1417_v62  ;;  %1718 = vmatprep.subr.bf16.mxu0 %v1931_v9  ;;  %v2525_v31 = vsel %vm2221_vm13, 4294967295, %v2524_v31 }
  0x5d   :  { %1720 = vmatpush3.bf16.msk.msra.mxu0 %vm2472_vm2, %v1932_v8  ;;  %vm2203_vm2 = vcmp.eq.s32.totalorder %v199_v24, %v2125_v5 }
  0x5e   :  { %1721 = vmatprep.subr.bf16.mxu0 %v1931_v9  ;;  %v2523_v26 = vsel %vm2203_vm2, 4294967295, %v2522_v26 }
  0x60   :  { %1410 = vmatmul.mubr.msk.bf16.gmra.mrb[4].mxu0 %vm2108_vm10, %v1409_v1 }
  0x61   :  { %1723 = vmatpush3.bf16.msk.msra.mxu0 %vm2473_vm5, %v1932_v8  ;;  %vm2476_vm5 = vmpackc.low %vm2203_vm2, %vm2198_vm9  ;;  %vm2249_vm9 = vcmp.eq.s32.totalorder %v227_v39, %v2125_v5  ;;  %vm2297_vm2 = vcmp.eq.s32.totalorder %v255_v55, %v2125_v5 }
  0x62   :  { %1724 = vmatprep.subr.bf16.mxu0 %v1931_v9  ;;  %v2531_v41 = vsel %vm2249_vm9, 4294967295, %v2530_v41  ;;  %v2539_v58 = vsel %vm2297_vm2, 4294967295, %v2538_v58 }
  0x65   :  { %1726 = vmatpush3.bf16.msk.msra.mxu0 %vm2476_vm5, %v1932_v8  ;;  %vm2479_vm5 = vmpackc.low %vm2226_vm1, %vm2221_vm13  ;;  %vm2267_vm13 = vcmp.eq.s32.totalorder %v234_v46, %v2125_v5  ;;  %vm2272_vm1 = vcmp.eq.s32.totalorder %v241_v47, %v2125_v5 }
  0x66   :  { %1727 = vmatprep.subr.bf16.mxu0 %v1931_v9  ;;  %v2533_v48 = vsel %vm2267_vm13, 4294967295, %v2532_v48  ;;  %v2535_v49 = vsel %vm2272_vm1, 4294967295, %v2534_v49 }
  0x69   :  { %1729 = vmatpush3.bf16.msk.msra.mxu0 %vm2479_vm5, %v1932_v8  ;;  %vm2482_vm5 = vmpackc.low %vm2249_vm9, %vm2244_vm0  ;;  %vm2489_vm0 = vmmov 0   ;;  %vm2292_vm9 = vcmp.eq.s32.totalorder %v248_v53, %v2125_v5 }
  0x6a   :  { %1730 = vmatprep.subr.bf16.mxu0 %v1931_v9  ;;  %1657 = vmatprep.mubr.msk.f32.mxu0 %vm2489_vm0, %v1934_v56  ;;  %v2537_v57 = vsel %vm2292_vm9, 4294967295, %v2536_v57 }
  0x6d   :  { %1732 = vmatpush3.bf16.msk.msra.mxu0 %vm2482_vm5, %v1932_v8  ;;  %vm2486_vm5 = vmpackc.low %vm2272_vm1, %vm2267_vm13 }
  0x6e   :  { %1733 = vmatprep.subr.bf16.mxu0 %v1931_v9 }
  0x71   :  { %1735 = vmatpush3.bf16.msk.msra.mxu0 %vm2486_vm5, %v1932_v8  ;;  %vm2487_vm5 = vmpackc.low %vm2297_vm2, %vm2292_vm9  ;;  %vm2542_vm9 = vcmp.lt.s32.totalorder %v2023_v13, 7 }
  0x72   :  { %1736 = vmatprep.subr.bf16.mxu0 %v1931_v9  ;;  %vm2543_vm2 = vmmov %vm2542_vm9 }
  0x73   :  { %vm2544_vm13 = vmmov %vm2543_vm2 }
  0x74   :  { %vm2545_vm1 = vmmov %vm2543_vm2 }
  0x75   :  { %1738 = vmatpush3.bf16.msk.msra.mxu0 %vm2487_vm5, %v1932_v8  ;;  %vm2488_vm5 = vcmask 1040384  }
 0x12b   :  { %v1511_v59 = vpop.f32.mrb[0].mxu0 }
 0x12c   :  { %v1512_v60 = vpop.f32.mrb[1].mxu0 }
 0x12d   :  { %v1513_v62 = vadd.f32 %v1512_v60, %v1511_v59  ;;  %v1514_v63 = vpop.f32.mrb[2].mxu0  ;;  %v1623_v0 = vpop.f32.mrb[0].mxu1 }
 0x12e   :  { %v1515_v1 = vpop.f32.mrb[3].mxu0  ;;  %v707_v2 = vpop.f32.mrb[1].mxu1 }
 0x12f   :  { %v1516_v3 = vadd.f32 %v1515_v1, %v1514_v63  ;;  %v2311_v4 = vadd.f32 %v1513_v62, %v707_v2  ;;  %v1624_v5 = vpop.f32.mrb[2].mxu1 }
 0x130   :  { %v710_v10 = vpop.f32.mrb[3].mxu1 }
 0x131   :  { %v2313_v11 = vadd.f32 %v1516_v3, %v710_v10  ;;  %v731_v23 = vmul.f32 %v2311_v4, %v2311_v4  ;;  %v1801_v3 = vld [vmem:[#allocation7 + $0x40] sm:$0xff]  }
 0x132   :  { %v1803_v10 = vld [vmem:[#allocation7 + $0x80] sm:$0xff]   ;;  %1550 = vmatprep.subr.bf16.mxu1 %v1801_v3 }
 0x133   :  { %v1517_v15 = vpop.f32.mrb[4].mxu0  ;;  %v732_v17 = vmul.f32 %v2313_v11, %v2313_v11  ;;  %v722_v24 = vadd.f32 %v2313_v11, %v2311_v4  ;;  %1660 = vmatprep.subr.bf16.mxu0 %v1803_v10 }
 0x134   :  { %v1518_v16 = vpop.f32.mrb[5].mxu0 }
 0x135   :  { %v1519_v18 = vadd.f32 %v1518_v16, %v1517_v15  ;;  %v1520_v21 = vpop.f32.mrb[6].mxu0  ;;  %v735_v29 = vadd.f32 %v732_v17, %v731_v23  ;;  %v1804_v15 = vld [vmem:[#allocation7 + $0x48] sm:$0xff]   ;;  %v1810_v23 = vld [vmem:[#allocation7 + $0x58] sm:$0xff]  }
 0x136   :  { %v1521_v22 = vpop.f32.mrb[7].mxu0  ;;  %v1805_v16 = vld [vmem:[#allocation7 + $0x8] sm:$0xff]  }
 0x137   :  { %v2321_v27 = vadd.f32 %v1623_v0, %v1519_v18  ;;  %v1522_v28 = vadd.f32 %v1521_v22, %v1520_v21  ;;  %v1806_v17 = vld [vmem:[#allocation7 + $0x88] sm:$0xff]   ;;  %v1807_v18 = vld [vmem:[#allocation7 + $0x50] sm:$0xff]  }
 0x138   :  { %v1808_v21 = vld [vmem:[#allocation7 + $0x10] sm:$0xff]  }
 0x139   :  { %v723_v30 = vadd.f32 %v722_v24, %v2321_v27  ;;  %v733_v36 = vmul.f32 %v2321_v27, %v2321_v27  ;;  %v2326_v37 = vadd.f32 %v1624_v5, %v1522_v28  ;;  %v1802_v5 = vld [vmem:[#allocation7] sm:$0xff]   ;;  %v1809_v22 = vld [vmem:[#allocation7 + $0x90] sm:$0xff]   ;;  %v1811_v24 = vld [vmem:[#allocation7 + $0x18] sm:$0xff]  }
 0x13a   :  { %1551 = vmatpush3.bf16.msra.mxu1 %v1802_v5  ;;  %v1812_v28 = vld [vmem:[#allocation7 + $0x98] sm:$0xff]  }
 0x13b   :  { %v736_v38 = vadd.f32 %v735_v29, %v733_v36  ;;  %v724_v39 = vadd.f32 %v723_v30, %v2326_v37  ;;  %v734_v42 = vmul.f32 %v2326_v37, %v2326_v37  ;;  %1552 = vmatprep.subr.bf16.mxu1 %v1804_v15  ;;  %v1813_v29 = vld [vmem:[#allocation7 + $0x60] sm:$0xff]  }
 0x13c   :  { %v1814_v30 = vld [vmem:[#allocation7 + $0x20] sm:$0xff]  }
 0x13d   :  { %v725_v45 = vrot.slane %v724_v39, 4  ;;  %v737_v46 = vadd.f32 %v736_v38, %v734_v42  ;;  %v1815_v36 = vld [vmem:[#allocation7 + $0xa0] sm:$0xff]   ;;  %v1816_v38 = vld [vmem:[#allocation7 + $0x68] sm:$0xff]  }
 0x13e   :  { %1553 = vmatpush3.bf16.msra.mxu1 %v1805_v16  ;;  %v1818_v42 = vld [vmem:[#allocation7 + $0xa8] sm:$0xff]  }
 0x13f   :  { %v726_v47 = vadd.f32 %v725_v45, %v724_v39  ;;  %v738_v50 = vrot.slane %v737_v46, 4  ;;  %1554 = vmatprep.subr.bf16.mxu1 %v1807_v18  ;;  %v1817_v39 = vld [vmem:[#allocation7 + $0x28] sm:$0xff]   ;;  %v1819_v45 = vld [vmem:[#allocation7 + $0x70] sm:$0xff]   ;;  %v822_v18 = vld [vmem:[%s2467_s3] sm:$0x1] }
 0x141   :  { %v727_v52 = vrot.slane %v726_v47, 2  ;;  %v739_v53 = vadd.f32 %v738_v50, %v737_v46  ;;  %v1820_v46 = vld [vmem:[#allocation7 + $0x30] sm:$0xff]   ;;  %v1822_v50 = vld [vmem:[#allocation7 + $0x78] sm:$0xff]  }
 0x142   :  { %1555 = vmatpush3.bf16.msra.mxu1 %v1808_v21 }
 0x143   :  { %v728_v55 = vadd.f32 %v727_v52, %v726_v47  ;;  %v740_v59 = vrot.slane %v739_v53, 2  ;;  %1556 = vmatprep.subr.bf16.mxu1 %v1810_v23  ;;  %v1821_v47 = vld [vmem:[#allocation7 + $0xb0] sm:$0xff]   ;;  %v1823_v52 = vld [vmem:[#allocation7 + $0x38] sm:$0xff]  }
 0x145   :  { %v729_v60 = vrot.slane %v728_v55, 1  ;;  %v741_v62 = vadd.f32 %v740_v59, %v739_v53  ;;  %v1824_v53 = vld [vmem:[#allocation7 + $0xb8] sm:$0xff]  }
 0x146   :  { %1557 = vmatpush3.bf16.msra.mxu1 %v1811_v24  ;;  %v843_v24 = vld [vmem:[%s2468_s4] sm:$0x1] }
 0x147   :  { %v742_v63 = vrot.slane %v741_v62, 1  ;;  %v730_v0 = vadd.f32 %v729_v60, %v728_v55  ;;  %1558 = vmatprep.subr.bf16.mxu1 %v1813_v29 }
 0x149   :  { %v743_v1 = vadd.f32 %v742_v63, %v741_v62 }
 0x14a   :  { %1559 = vmatpush3.bf16.msra.mxu1 %v1814_v30 }
 0x14b   :  { %v745_v2 = vsel %vm2488_vm5, %v730_v0, %v743_v1  ;;  %1560 = vmatprep.subr.bf16.mxu1 %v1816_v38  ;;  %vm2540_vm5 = vcmp.lt.s32.totalorder %v2023_v13, 1 }
 0x14c   :  { %1658 = vmatmul.mubr.f32.vlgmr.msra.gmra.mrb[8].mxu0 %v745_v2  ;;  %v1935_v2 = vmov 1966171168   ;;  %vm2541_vm0 = vmmov %vm2540_vm5 }
 0x14d   :  { %1661 = vmatpush3.bf16.msra.mxu0 %v1803_v10  ;;  %v827_v3 = vunpack.c.l.s4 %v1935_v2 }
 0x14e   :  { %1662 = vmatprep.subr.bf16.mxu0 %v1806_v17  ;;  %1561 = vmatpush3.bf16.msra.mxu1 %v1817_v39 }
 0x14f   :  { %1562 = vmatprep.subr.bf16.mxu1 %v1819_v45  ;;  %v828_v5 = vunpack.c.0.s8 %v827_v3 }
 0x151   :  { %1663 = vmatpush3.bf16.msra.mxu0 %v1806_v17  ;;  %v2334_v10 = vsub.s32 %v828_v5, %v2023_v13 }
 0x152   :  { %1664 = vmatprep.subr.bf16.mxu0 %v1809_v22  ;;  %1563 = vmatpush3.bf16.msra.mxu1 %v1820_v46 }
 0x153   :  { %1564 = vmatprep.subr.bf16.mxu1 %v1822_v50 }
 0x155   :  { %1665 = vmatpush3.bf16.msra.mxu0 %v1809_v22  ;;  %v2342_v22 = vsub.s32 0, %v2023_v13 }
 0x156   :  { %1666 = vmatprep.subr.bf16.mxu0 %v1812_v28  ;;  %1565 = vmatpush3.bf16.msra.mxu1 %v1823_v52 }
 0x157   :  { %1739 = vmatprep.subr.bf16.mxu1 %v1931_v9 }
 0x159   :  { %1667 = vmatpush3.bf16.msra.mxu0 %v1812_v28 }
 0x15a   :  { %1668 = vmatprep.subr.bf16.mxu0 %v1815_v36 }
 0x15d   :  { %1669 = vmatpush3.bf16.msra.mxu0 %v1815_v36 }
 0x15e   :  { %1670 = vmatprep.subr.bf16.mxu0 %v1818_v42 }
 0x161   :  { %1671 = vmatpush3.bf16.msra.mxu0 %v1818_v42 }
 0x162   :  { %1672 = vmatprep.subr.bf16.mxu0 %v1821_v47 }
 0x165   :  { %1673 = vmatpush3.bf16.msra.mxu0 %v1821_v47 }
 0x166   :  { %1674 = vmatprep.subr.bf16.mxu0 %v1824_v53 }
 0x169   :  { %1675 = vmatpush3.bf16.msra.mxu0 %v1824_v53 }
 0x21f   :  { %v812_v55 = vpop.f32.mrb[8].mxu0 }
 0x220   :  { %v816_v59 = vmul.f32 0.001953125, %v812_v55  ;;  %v1659_v60 = vpop.f32.mrb[9].mxu0 }
 0x222   :  { %v817_v62 = vmul.f32 %v816_v59, %v816_v59 }
 0x224   :  { %v819_v63 = vrot.slane %v817_v62, 7 }
 0x226   :  { %v821_v0 = vsub.f32 %v816_v59, %v819_v63 }
 0x228   :  { %v823_v1 = vadd.f32 1e-05, %v821_v0 }
 0x22a   :  { %1825 = vrsqrt.f32 %v823_v1 }
 0x234   :  { %v1826_v15 = vpop.eup %1825 }
 0x235   :  { %v832_v16 = vrot.slane %v1826_v15, %v2334_v10 }
 0x237   :  { %v833_v17 = vcombine.high %v832_v16, %v832_v16 }
 0x239   :  { %v840_v21 = vrot.slane %v833_v17, %v2334_v10 }
 0x23b   :  { %v842_v23 = vmul.f32 %v840_v21, %v822_v18 }
 0x23d   :  { %v844_v28 = vmul.f32 %v842_v23, %v816_v59  ;;  %v850_v29 = vrot.slane %v842_v23, %v2342_v22 }
 0x23f   :  { %v845_v30 = vsub.f32 %v843_v24, %v844_v28  ;;  %v854_v36 = vmul.f32 %v850_v29, %v2321_v27  ;;  %v855_v38 = vmul.f32 %v850_v29, %v2326_v37  ;;  %v852_v42 = vmul.f32 %v850_v29, %v2311_v4 }
 0x240   :  { %v853_v45 = vmul.f32 %v850_v29, %v2313_v11 }
 0x241   :  { %v860_v39 = vrot.slane %v845_v30, %v2342_v22 }
 0x243   :  { %v864_v46 = vadd.f32 %v860_v39, %v854_v36  ;;  %v865_v47 = vadd.f32 %v860_v39, %v855_v38  ;;  %v862_v50 = vadd.f32 %v860_v39, %v852_v42  ;;  %v863_v52 = vadd.f32 %v860_v39, %v853_v45 }
 0x245   :  { %v869_v53 = vmax.f32 %v865_v47, 0.0  ;;  %v866_v55 = vmax.f32 %v862_v50, 0.0  ;;  %v867_v59 = vmax.f32 %v863_v52, 0.0  ;;  %v868_v60 = vmax.f32 %v864_v46, 0.0 }
 0x247   :  { %v870_v62 = vrot.slane %v866_v55, 7  ;;  %v871_v63 = vrot.slane %v867_v59, 7  ;;  %v895_v0 = vpack.c.bf16 %v867_v59, %v866_v55  ;;  %v873_v27 = vrot.slane %v869_v53, 7 }
 0x248   :  { %v882_v1 = vrot.slane %v866_v55, 1  ;;  %v883_v37 = vrot.slane %v867_v59, 1  ;;  %v884_v2 = vrot.slane %v868_v60, 1  ;;  %v885_v3 = vrot.slane %v869_v53, 1 }
 0x249   :  { %1124 = vmatprep.mubr.bf16.mxu1 %v895_v0  ;;  %v876_v4 = vsel %vm2540_vm5, %v870_v62, %v871_v63  ;;  %v877_v11 = vsel %vm2541_vm0, %v873_v27, %v870_v62  ;;  %v898_v17 = vpack.c.bf16 %v869_v53, %v868_v60  ;;  %v872_v24 = vrot.slane %v868_v60, 7  ;;  %vm2546_vm0 = vmpackc.low %vm2133_vm12, %vm2128_vm11 }
 0x24a   :  { %v1461_v5 = vpack.c.bf16 %v876_v4, %v877_v11  ;;  %v887_v15 = vsel %vm2542_vm9, %v883_v37, %v884_v2  ;;  %v888_v16 = vsel %vm2543_vm2, %v882_v1, %v883_v37  ;;  %v886_v21 = vsel %vm2544_vm13, %v884_v2, %v885_v3  ;;  %vm2551_vm11 = vmpackc.low %vm2180_vm4, %vm2175_vm3 }
 0x24b   :  { %v1469_v18 = vpack.c.bf16 %v887_v15, %v888_v16  ;;  %v889_v23 = vsel %vm2545_vm1, %v885_v3, %v882_v1  ;;  %vm2547_vm1 = vmmov %vm2540_vm5  ;;  %vm2552_vm12 = vnez %v2523_v26  ;;  %vm2553_vm13 = vnez %v2521_v25 }
 0x24c   :  { %1462 = vmatmul.mubr.msk.bf16.vlgmr.msra.gmra.mrb[4].mxu1 %vm2068_vm6, %v1461_v5  ;;  %v1473_v28 = vpack.c.bf16 %v889_v23, %v886_v21  ;;  %v874_v29 = vsel %vm2547_vm1, %v872_v24, %v873_v27  ;;  %vm2548_vm6 = vmmov %vm2547_vm1  ;;  %vm2558_vm3 = vnez %v2531_v41  ;;  %vm2559_vm4 = vnez %v2529_v40 }
 0x24d   :  { %1676 = vmatprep.mubr.msk.bf16.mxu0 %vm2083_vm7, %v1469_v18  ;;  %1132 = vmatprep.mubr.bf16.mxu1 %v898_v17  ;;  %v875_v44 = vsel %vm2548_vm6, %v871_v63, %v872_v24  ;;  %vm2549_vm7 = vmpackc.low %vm2157_vm15, %vm2152_vm14  ;;  %vm2556_vm15 = vnez %v2525_v31  ;;  %vm2561_vm9 = vnez %v2535_v49  ;;  %vm2564_vm6 = vnez %v2539_v58  ;;  %v1289_v24 = vld [vmem:[%s2469_s5] sm:$0x1]  ;;  %s1936_s5 = smov [#allocation8]  }
 0x24e   :  { %1677 = vmatmul.mubr.msk.bf16.vlgmr.msra.gmra.mrb[12].mxu0 %vm2094_vm8, %v1473_v28  ;;  %1741 = vmatpush3.bf16.msk.msra.mxu1 %vm2546_vm0, %v1932_v8  ;;  %v1465_v51 = vpack.c.bf16 %v874_v29, %v875_v44  ;;  %vm2550_vm8 = vmmov 0   ;;  %vm2554_vm14 = vmpackc.low %vm2552_vm12, %vm2553_vm13  ;;  %vm2562_vm0 = vnez %v2533_v48  ;;  %v1310_v44 = vld [vmem:[%s2470_s6] sm:$0x1]  ;;  %s1350_s21 = sshll.u32 %s1936_s5, 4  ;;  %s1351_s21 = int_to_ptr.vmem [resolvable:$true] %s1350_s21 }
 0x24f   :  { %1742 = vmatprep.subr.bf16.mxu1 %v1931_v9  ;;  %vm2560_vm5 = vmpackc.low %vm2558_vm3, %vm2559_vm4  ;;  %s1895_s6 = scalar_lea.vmem %s1351_s21, 512  ;;  %p1900_p11 = scmp.lt.s32.totalorder %s1351_s21, %s1351_s21 }
 0x250   :  { %vm2563_vm1 = vmpackc.low %vm2561_vm9, %vm2562_vm0  ;;  %p1896_p10 = scmp.ne.s32.totalorder %s1351_s21, %s1895_s6  ;;  %p1901_p12 = scmp.lt.s32.totalorder %s1895_s6, %s1895_s6 }
 0x252   :  { %1744 = vmatpush3.bf16.msk.msra.mxu1 %vm2549_vm7, %v1932_v8  ;;  %vm2565_vm7 = vnez %v2537_v57  ;;  %p1902_p13 = por %p1901_p12, %p1900_p11 }
 0x253   :  { %1745 = vmatprep.subr.bf16.mxu1 %v1931_v9 }
 0x254   :  { %1466 = vmatmul.mubr.msk.bf16.gmra.mrb[8].mxu1 %vm2108_vm10, %v1465_v51  ;;  %vm2555_vm10 = vnez %v2527_v35  ;;  %p1903_p0 = pnand %p1902_p13, %p1896_p10 }
 0x255   :  { %1712 = vmatprep.mubr.msk.f32.mxu1 %vm2550_vm8, %v1934_v56  ;;  %vm2557_vm2 = vmpackc.low %vm2555_vm10, %vm2556_vm15 }
 0x256   :  { %1747 = vmatpush3.bf16.msk.msra.mxu1 %vm2551_vm11, %v1932_v8  ;;  %vm2566_vm8 = vmpackc.low %vm2564_vm6, %vm2565_vm7  ;;  %vm2567_vm11 = vcmask 1040384  }
 0x257   :  { %1748 = vmatprep.subr.bf16.mxu1 %v1931_v9 }
 0x25a   :  { %1750 = vmatpush3.bf16.msk.msra.mxu1 %vm2554_vm14, %v1932_v8 }
 0x25b   :  { %1751 = vmatprep.subr.bf16.mxu1 %v1931_v9 }
 0x25e   :  { %1753 = vmatpush3.bf16.msk.msra.mxu1 %vm2557_vm2, %v1932_v8 }
 0x25f   :  { %1754 = vmatprep.subr.bf16.mxu1 %v1931_v9 }
 0x262   :  { %1756 = vmatpush3.bf16.msk.msra.mxu1 %vm2560_vm5, %v1932_v8 }
 0x263   :  { %1757 = vmatprep.subr.bf16.mxu1 %v1931_v9 }
 0x266   :  { %1759 = vmatpush3.bf16.msk.msra.mxu1 %vm2563_vm1, %v1932_v8 }
 0x267   :  { %1760 = vmatprep.subr.bf16.mxu1 %v1931_v9 }
 0x26a   :  { %1762 = vmatpush3.bf16.msk.msra.mxu1 %vm2566_vm8, %v1932_v8 }
 0x31f   :  { %v1566_v13 = vpop.f32.mrb[4].mxu1 }
 0x320   :  { %v1567_v54 = vpop.f32.mrb[5].mxu1 }
 0x321   :  { %v1568_v61 = vadd.f32 %v1567_v54, %v1566_v13  ;;  %v1678_v6 = vpop.f32.mrb[12].mxu0  ;;  %v1569_v7 = vpop.f32.mrb[6].mxu1 }
 0x322   :  { %v1175_v12 = vpop.f32.mrb[13].mxu0  ;;  %v1570_v14 = vpop.f32.mrb[7].mxu1 }
 0x323   :  { %v1176_v19 = vadd.f32 %v1568_v61, %v1175_v12  ;;  %v1571_v20 = vadd.f32 %v1570_v14, %v1569_v7  ;;  %v1679_v25 = vpop.f32.mrb[14].mxu0 }
 0x324   :  { %v1178_v26 = vpop.f32.mrb[15].mxu0 }
 0x325   :  { %v1179_v31 = vadd.f32 %v1571_v20, %v1178_v26  ;;  %v1199_v56 = vmul.f32 %v1176_v19, %v1176_v19 }
 0x327   :  { %v1572_v9 = vpop.f32.mrb[8].mxu1  ;;  %v1200_v40 = vmul.f32 %v1179_v31, %v1179_v31  ;;  %v1190_v8 = vadd.f32 %v1179_v31, %v1176_v19 }
 0x328   :  { %v1573_v35 = vpop.f32.mrb[9].mxu1 }
 0x329   :  { %v1574_v41 = vadd.f32 %v1573_v35, %v1572_v9  ;;  %v1575_v48 = vpop.f32.mrb[10].mxu1  ;;  %v1203_v30 = vadd.f32 %v1200_v40, %v1199_v56 }
 0x32a   :  { %v1576_v49 = vpop.f32.mrb[11].mxu1 }
 0x32b   :  { %v1184_v57 = vadd.f32 %v1678_v6, %v1574_v41  ;;  %v1577_v58 = vadd.f32 %v1576_v49, %v1575_v48 }
 0x32d   :  { %v1191_v36 = vadd.f32 %v1190_v8, %v1184_v57  ;;  %v1201_v38 = vmul.f32 %v1184_v57, %v1184_v57  ;;  %v1187_v39 = vadd.f32 %v1679_v25, %v1577_v58 }
 0x32f   :  { %v1204_v42 = vadd.f32 %v1203_v30, %v1201_v38  ;;  %v1192_v45 = vadd.f32 %v1191_v36, %v1187_v39  ;;  %v1202_v46 = vmul.f32 %v1187_v39, %v1187_v39 }
 0x331   :  { %v1193_v47 = vrot.slane %v1192_v45, 4  ;;  %v1205_v50 = vadd.f32 %v1204_v42, %v1202_v46 }
 0x333   :  { %v1194_v52 = vadd.f32 %v1193_v47, %v1192_v45  ;;  %v1206_v53 = vrot.slane %v1205_v50, 4 }
 0x335   :  { %v1195_v55 = vrot.slane %v1194_v52, 2  ;;  %v1207_v59 = vadd.f32 %v1206_v53, %v1205_v50 }
 0x337   :  { %v1196_v60 = vadd.f32 %v1195_v55, %v1194_v52  ;;  %v1208_v62 = vrot.slane %v1207_v59, 2 }
 0x339   :  { %v1197_v63 = vrot.slane %v1196_v60, 1  ;;  %v1209_v0 = vadd.f32 %v1208_v62, %v1207_v59 }
 0x33b   :  { %v1210_v27 = vrot.slane %v1209_v0, 1  ;;  %v1198_v1 = vadd.f32 %v1197_v63, %v1196_v60 }
 0x33d   :  { %v1211_v37 = vadd.f32 %v1210_v27, %v1209_v0 }
 0x33f   :  { %v1212_v2 = vsel %vm2567_vm11, %v1198_v1, %v1211_v37 }
 0x340   :  { %1713 = vmatmul.mubr.f32.vlgmr.msra.gmra.mrb[12].mxu1 %v1212_v2 }
 0x413   :  { %v1279_v4 = vpop.f32.mrb[12].mxu1 }
 0x414   :  { %v1283_v11 = vmul.f32 0.001953125, %v1279_v4  ;;  %v1714_v3 = vpop.f32.mrb[13].mxu1 }
 0x416   :  { %v1284_v5 = vmul.f32 %v1283_v11, %v1283_v11 }
 0x418   :  { %v1286_v15 = vrot.slane %v1284_v5, 7 }
 0x41a   :  { %v1288_v16 = vsub.f32 %v1283_v11, %v1286_v15 }
 0x41c   :  { %v1290_v17 = vadd.f32 1e-05, %v1288_v16 }
 0x41e   :  { %1827 = vrsqrt.f32 %v1290_v17 }
 0x428   :  { %v1828_v18 = vpop.eup %1827 }
 0x429   :  { %v1299_v21 = vrot.slane %v1828_v18, %v2334_v10 }
 0x42b   :  { %v1300_v23 = vcombine.high %v1299_v21, %v1299_v21 }
 0x42d   :  { %v1307_v28 = vrot.slane %v1300_v23, %v2334_v10 }
 0x42f   :  { %v1309_v29 = vmul.f32 %v1307_v28, %v1289_v24 }
 0x431   :  { %v1311_v51 = vmul.f32 %v1309_v29, %v1283_v11  ;;  %v1317_v13 = vrot.slane %v1309_v29, %v2342_v22 }
 0x433   :  { %v1312_v54 = vsub.f32 %v1310_v44, %v1311_v51  ;;  %v1319_v61 = vmul.f32 %v1317_v13, %v1176_v19  ;;  %v1320_v7 = vmul.f32 %v1317_v13, %v1179_v31  ;;  %v1321_v12 = vmul.f32 %v1317_v13, %v1184_v57 }
 0x434   :  { %v1322_v14 = vmul.f32 %v1317_v13, %v1187_v39 }
 0x435   :  { %v1327_v6 = vrot.slane %v1312_v54, %v2342_v22 }
 0x437   :  { %v1329_v20 = vadd.f32 %v1327_v6, %v1319_v61  ;;  %v1330_v25 = vadd.f32 %v1327_v6, %v1320_v7  ;;  %v1331_v26 = vadd.f32 %v1327_v6, %v1321_v12  ;;  %v1332_v9 = vadd.f32 %v1327_v6, %v1322_v14 }
 0x439   :  { %v1333_v10 = vadd.f32 %v1329_v20, %v2043_v32  ;;  %v1334_v35 = vadd.f32 %v1330_v25, %v2045_v33  ;;  %v1335_v40 = vadd.f32 %v1331_v26, %v2063_v43  ;;  %v1336_v41 = vadd.f32 %v1332_v9, %v2047_v34 }
 0x43b   :  { %v1337_v19 = vmax.f32 %v1333_v10, 0.0  ;;  %v1338_v48 = vmax.f32 %v1334_v35, 0.0  ;;  %v1339_v22 = vmax.f32 %v1335_v40, 0.0  ;;  %v1340_v31 = vmax.f32 %v1336_v41, 0.0 }
 0x43d   :  { %1341 = vst [vmem:[#allocation8] sm:$0xff] %v1337_v19  ;;  %1342 = vst [vmem:[#allocation8 + $0x8] sm:$0xff] %v1338_v48 }
 0x43e   :  { %1343 = vst [vmem:[#allocation8 + $0x10] sm:$0xff] %v1339_v22  ;;  %1344 = vst [vmem:[#allocation8 + $0x18] sm:$0xff] %v1340_v31 }
 0x43f   :  { %1906 = shalt.err (!%p1903_p0)
}
 0x440   :  { %s1907_s24 = scalar_lea.hbm %s2471_s7, 512 }
 0x441   :  { %p1908_p1 = scmp.ne.s32.totalorder %s2471_s7, %s1907_s24  ;;  %p1911_p2 = scmp.lt.u32.totalorder %s1907_s24, %s2471_s7 }
 0x443   :  { %p1913_p3 = pnand %p1911_p2, %p1908_p1 }
 0x445   :  { %1916 = shalt.err (!%p1913_p3)
}
 0x446   :  { %1356 = dma.vmem_to_hbm [thread:$0]  %s1351_s21, 512, %s2471_s7, [#allocation4], %s1927_s1, %s1927_s1, %s1928_s25  }
 0x447   :  { %1921 = dma.done.wait [#allocation4], 512  }
 0x448   :  { %1922 = vsyncadd [#allocation4], 4294966784 }
 0x449   :  { %1360 = vsyncpa [#allocation3], 1 }
 0x44a   :  { %1361 = vsyncpa [#allocation6], 1 }
 0x44b   :  { %1362 = vsyncpa [#allocation4], 1 }

</bundles_post_ra>
